<compile_context>
chip_gen: v7x
topology: tpu7x:2x2x1
jax: 0.10.0
libtpu: 0.0.40
codegen_flags: <defaults>
</compile_context>

<pallas_src>
import functools

import jax
import jax.numpy as jnp
import numpy as np
from jax import lax
from jax.experimental import pallas as pl
from jax.experimental.pallas import tpu as pltpu


# ----------------------------- fused Pallas kernel ---------------------------

def _double_conv_kernel(patches_ref, w0_ref, w1a_ref, w1b_ref, wsc_ref,
                        b0_ref, b1_ref, bsc_ref, mask_ref, o_ref, *, W):
    """Whole DoubleConv for one batch element; lane axis = H*W.

    patches_ref : (1, 9*Cin, HW)  im2col of x, rows ordered (kh, kw, cin)
    w0_ref      : (Cout, 9*Cin)   dense layer 0 weight (BN folded)
    w1a_ref     : (Cout, 9*Cin)   dense layer 1 weight, x-part of the concat
    w1b_ref     : (9, Cout, Cout) dense layer 1 weight, out0-part, per tap
    wsc_ref     : (Cout, Cin)     1x1 shortcut weight (BN folded)
    b0/b1/bsc   : (Cout, 1)       folded biases
    mask_ref    : (9, 1, HW)      per-tap validity masks for shifting out0
    o_ref       : (1, Cout, HW)
    """
    Cin = wsc_ref.shape[1]
    HW = o_ref.shape[-1]

    patches = patches_ref[0]                                      # (9*Cin, HW)

    # Shortcut branch: 1x1 conv on x == center tap (kh=kw=1) rows of patches,
    # so x is not read from HBM a second time.
    x_center = patches_ref[0, 4 * Cin:5 * Cin, :]                 # (Cin, HW)
    sc = jnp.dot(wsc_ref[...], x_center, preferred_element_type=jnp.float32)
    sc = jnp.maximum(sc + bsc_ref[...], 0.0)

    # Dense layer 0: a single K = 9*Cin matmul (instead of 9 tiny K=Cin dots).
    out0 = jnp.dot(w0_ref[...], patches, preferred_element_type=jnp.float32)
    out0 = jnp.maximum(out0 + b0_ref[...], 0.0)                   # stays in VMEM

    # Dense layer 1 over cat([x, out0], channel):
    #   conv(cat(x, out0)) == W1a * patches(x)  +  sum_t W1b[t] * shift_t(out0)
    acc = jnp.dot(w1a_ref[...], patches, preferred_element_type=jnp.float32)
    for t in range(9):                                            # unrolled taps
        dh, dw = t // 3 - 1, t % 3 - 1
        shift = (-(dh * W + dw)) % HW
        if shift == 0:
            tap = out0                                            # center tap
        else:
            # shifted[p] = out0[p + dh*W + dw]; mask zeroes wrapped / off-image lanes
            tap = jnp.roll(out0, shift, axis=1) * mask_ref[t]
        acc += jnp.dot(w1b_ref[t], tap, preferred_element_type=jnp.float32)
    out1 = jnp.maximum(acc + b1_ref[...], 0.0)

    o_ref[0] = (sc + out1).astype(o_ref.dtype)                    # (Cout, HW) lane-dense


# ------------------------------ pallas_call glue -----------------------------

def double_conv_forward(x_nchw, p):
    """Fused DoubleConv forward.  x_nchw: (N, Cin, H, W) f32 -> (N, Cout, H, W)."""
    N, Cin, H, W = x_nchw.shape
    Cout = p["w0"].shape[-1]
    HW = H * W

    # im2col of x (tap-major then cin), spatial flattened onto the lane axis.
    xp = jnp.pad(x_nchw, ((0, 0), (0, 0), (1, 1), (1, 1)))
    taps = [xp[:, :, kh:kh + H, kw:kw + W] for kh in range(3) for kw in range(3)]
    patches = jnp.stack(taps, axis=1).reshape(N, 9 * Cin, HW)     # (N, 9*Cin, HW)

    # Weights pre-arranged for (Cout, K) x (K, HW) channels-first matmuls.
    w0t = p["w0"].reshape(9 * Cin, Cout).T                        # (Cout, 9*Cin)
    w1a = p["w1"][:, :, :Cin, :].reshape(9 * Cin, Cout).T         # x-part of the concat
    w1b = jnp.transpose(p["w1"][:, :, Cin:, :].reshape(9, Cout, Cout), (0, 2, 1))
    wsct = p["wsc"].T                                             # (Cout, Cin)
    b0 = p["b0"].reshape(Cout, 1)
    b1 = p["b1"].reshape(Cout, 1)
    bsc = p["bsc"].reshape(Cout, 1)

    # Per-tap validity masks for shifting out0 inside the kernel.
    hh = jnp.arange(HW, dtype=jnp.int32) // W
    ww = jnp.arange(HW, dtype=jnp.int32) % W
    mask_list = []
    for kh in range(3):
        for kw in range(3):
            dh, dw = kh - 1, kw - 1
            ok = (hh + dh >= 0) & (hh + dh < H) & (ww + dw >= 0) & (ww + dw < W)
            mask_list.append(ok.astype(jnp.float32))
    masks = jnp.stack(mask_list, axis=0).reshape(9, 1, HW)

    kernel = functools.partial(_double_conv_kernel, W=W)
    out = pl.pallas_call(
        kernel,
        out_shape=jax.ShapeDtypeStruct((N, Cout, HW), x_nchw.dtype),
        grid_spec=pltpu.PrefetchScalarGridSpec(
            num_scalar_prefetch=0,
            grid=(N,),
            in_specs=[
                pl.BlockSpec((1, 9 * Cin, HW), lambda n: (n, 0, 0)),
                pl.BlockSpec((Cout, 9 * Cin), lambda n: (0, 0)),
                pl.BlockSpec((Cout, 9 * Cin), lambda n: (0, 0)),
                pl.BlockSpec((9, Cout, Cout), lambda n: (0, 0, 0)),
                pl.BlockSpec((Cout, Cin), lambda n: (0, 0)),
                pl.BlockSpec((Cout, 1), lambda n: (0, 0)),
                pl.BlockSpec((Cout, 1), lambda n: (0, 0)),
                pl.BlockSpec((Cout, 1), lambda n: (0, 0)),
                pl.BlockSpec((9, 1, HW), lambda n: (0, 0, 0)),
            ],
            out_specs=pl.BlockSpec((1, Cout, HW), lambda n: (n, 0, 0)),
        ),
        compiler_params=pltpu.CompilerParams(
            dimension_semantics=("parallel",)),   # batch elems independent (v7x: 2 TCs)
    )(patches, w0t, w1a, w1b, wsct, b0, b1, bsc, masks)
    return out.reshape(N, Cout, H, W)             # free: already in NCHW order


# --------------------------- parameters / BN fold ----------------------------

BN_EPS = 1e-5


def fold_bn(w, b, gamma, beta, mean, var):
    """Fold inference-mode BatchNorm into conv weight/bias (Cout on last axis)."""
    scale = gamma / jnp.sqrt(var + BN_EPS)
    return w * scale, (b - mean) * scale + beta


def init_params(key, cin, cout):
    """Deterministic synthetic parameters for DoubleConv(cin, cout, n_layers=2)."""
    ks = jax.random.split(key, 12)

    def bn(k):
        g = 1.0 + 0.1 * jax.random.normal(k, (cout,), jnp.float32)
        bt = 0.1 * jax.random.normal(jax.random.fold_in(k, 1), (cout,), jnp.float32)
        mu = 0.1 * jax.random.normal(jax.random.fold_in(k, 2), (cout,), jnp.float32)
        var = 0.5 + jax.random.uniform(jax.random.fold_in(k, 3), (cout,), jnp.float32)
        return g, bt, mu, var

    # dense layer 0: Conv2d(cin, cout, 3) + BN
    w0 = 0.1 * jax.random.normal(ks[0], (3, 3, cin, cout), jnp.float32)
    b0 = 0.1 * jax.random.normal(ks[1], (cout,), jnp.float32)
    w0f, b0f = fold_bn(w0, b0, *bn(ks[2]))

    # dense layer 1: Conv2d(cin + cout, cout, 3) + BN
    c1 = cin + cout
    w1 = 0.1 * jax.random.normal(ks[3], (3, 3, c1, cout), jnp.float32)
    b1 = 0.1 * jax.random.normal(ks[4], (cout,), jnp.float32)
    w1f, b1f = fold_bn(w1, b1, *bn(ks[5]))

    # shortcut: Conv2d(cin, cout, 1, bias=False) + BN
    wsc = 0.1 * jax.random.normal(ks[6], (cin, cout), jnp.float32)
    wscf, bscf = fold_bn(wsc, jnp.zeros((cout,), jnp.float32), *bn(ks[7]))

    return dict(w0=w0f, b0=b0f, w1=w1f, b1=b1f, wsc=wscf, bsc=bscf)


# ------------------------------ pure-JAX reference ---------------------------

def _ref_conv_bn_relu(x, w, b):
    y = lax.conv_general_dilated(x, w, (1, 1), "SAME",
                                 dimension_numbers=("NCHW", "HWIO", "NCHW"),
                                 precision=lax.Precision.HIGHEST)
    return jnp.maximum(y + b[None, :, None, None], 0.0)


def double_conv_ref(x, p):
    sc = jnp.einsum("nchw,co->nohw", x, p["wsc"],
                    precision=lax.Precision.HIGHEST) + p["bsc"][None, :, None, None]
    sc = jnp.maximum(sc, 0.0)
    out0 = _ref_conv_bn_relu(x, p["w0"], p["b0"])
    x1 = jnp.concatenate([x, out0], axis=1)                       # torch.cat dim=1
    out1 = _ref_conv_bn_relu(x1, p["w1"], p["b1"])
    return sc + out1


# ------------------------------------ main -----------------------------------

if __name__ == "__main__":
    key = jax.random.PRNGKey(0)
    kx, kp = jax.random.split(key)

    N, Cin, H, W = 2, 4, 16, 16
    Cout = 8
    x = jax.random.normal(kx, (N, Cin, H, W), jnp.float32)        # NCHW like PyTorch
    params = init_params(kp, Cin, Cout)

    out = jax.block_until_ready(double_conv_forward(x, params))
    ref = jax.block_until_ready(double_conv_ref(x, params))

    assert out.shape == (N, Cout, H, W), out.shape
    np.testing.assert_allclose(np.asarray(out), np.asarray(ref),
                               rtol=1e-4, atol=1e-4)
    print("KERNEL_OK")
</pallas_src>

<mosaic_0001>
module attributes {stable_mosaic.version = 11 : i64} {
  func.func @_double_conv_kernel(%arg0: i32, %arg1: memref<1x36x256xf32, #tpu.memory_space<vmem>>, %arg2: memref<8x36xf32, #tpu.memory_space<vmem>>, %arg3: memref<8x36xf32, #tpu.memory_space<vmem>>, %arg4: memref<9x8x8xf32, #tpu.memory_space<vmem>>, %arg5: memref<8x4xf32, #tpu.memory_space<vmem>>, %arg6: memref<8x1xf32, #tpu.memory_space<vmem>>, %arg7: memref<8x1xf32, #tpu.memory_space<vmem>>, %arg8: memref<8x1xf32, #tpu.memory_space<vmem>>, %arg9: memref<9x1x256xf32, #tpu.memory_space<vmem>>, %arg10: memref<1x8x256xf32, #tpu.memory_space<vmem>>) attributes {dimension_semantics = [#tpu.dimension_semantics<parallel>], iteration_bounds = array<i64: 2>, scalar_prefetch = 0 : i64, scratch_operands = 0 : i64, tpu.core_type = #tpu.core_type<tc>, window_params = [{transform_indices = @transform_0, window_bounds = array<i64: 1, 36, 256>}, {pipeline_mode = #tpu.pipeline_mode<synchronous>, transform_indices = @transform_1, window_bounds = array<i64: 8, 36>}, {pipeline_mode = #tpu.pipeline_mode<synchronous>, transform_indices = @transform_2, window_bounds = array<i64: 8, 36>}, {pipeline_mode = #tpu.pipeline_mode<synchronous>, transform_indices = @transform_3, window_bounds = array<i64: 9, 8, 8>}, {pipeline_mode = #tpu.pipeline_mode<synchronous>, transform_indices = @transform_4, window_bounds = array<i64: 8, 4>}, {pipeline_mode = #tpu.pipeline_mode<synchronous>, transform_indices = @transform_5, window_bounds = array<i64: 8, 1>}, {pipeline_mode = #tpu.pipeline_mode<synchronous>, transform_indices = @transform_6, window_bounds = array<i64: 8, 1>}, {pipeline_mode = #tpu.pipeline_mode<synchronous>, transform_indices = @transform_7, window_bounds = array<i64: 8, 1>}, {pipeline_mode = #tpu.pipeline_mode<synchronous>, transform_indices = @transform_8, window_bounds = array<i64: 9, 1, 256>}, {transform_indices = @transform_9, window_bounds = array<i64: 1, 8, 256>}]} {
    %c0 = arith.constant 0 : index
    %c0_0 = arith.constant 0 : index
    %c0_1 = arith.constant 0 : index
    %0 = vector.load %arg1[%c0, %c0_0, %c0_1] : memref<1x36x256xf32, #tpu.memory_space<vmem>>, vector<1x36x256xf32>
    %1 = vector.shape_cast %0 : vector<1x36x256xf32> to vector<36x256xf32>
    %c0_2 = arith.constant 0 : index
    %c16 = arith.constant 16 : index
    %c0_3 = arith.constant 0 : index
    %2 = vector.load %arg1[%c0_2, %c16, %c0_3] : memref<1x36x256xf32, #tpu.memory_space<vmem>>, vector<1x4x256xf32>
    %3 = vector.shape_cast %2 : vector<1x4x256xf32> to vector<4x256xf32>
    %c0_4 = arith.constant 0 : index
    %c0_5 = arith.constant 0 : index
    %4 = vector.load %arg5[%c0_4, %c0_5] : memref<8x4xf32, #tpu.memory_space<vmem>>, vector<8x4xf32>
    %cst = arith.constant dense<0.000000e+00> : vector<8x256xf32>
    %5 = tpu.matmul %4, %3, %cst {dimension_numbers = #tpu.dot_dimension_numbers<[1], [0], [0], [1], [0, 0, 1, 1], [], []>} : vector<8x4xf32>, vector<4x256xf32>, vector<8x256xf32> -> vector<8x256xf32>
    %c0_6 = arith.constant 0 : index
    %c0_7 = arith.constant 0 : index
    %6 = vector.load %arg8[%c0_6, %c0_7] : memref<8x1xf32, #tpu.memory_space<vmem>>, vector<8x1xf32>
    %7 = vector.broadcast %6 : vector<8x1xf32> to vector<8x256xf32>
    %8 = arith.addf %5, %7 : vector<8x256xf32>
    %cst_8 = arith.constant 0.000000e+00 : f32
    %9 = vector.broadcast %cst_8 : f32 to vector<8x256xf32>
    %10 = arith.maximumf %8, %9 : vector<8x256xf32>
    %c0_9 = arith.constant 0 : index
    %c0_10 = arith.constant 0 : index
    %11 = vector.load %arg2[%c0_9, %c0_10] : memref<8x36xf32, #tpu.memory_space<vmem>>, vector<8x36xf32>
    %cst_11 = arith.constant dense<0.000000e+00> : vector<8x256xf32>
    %12 = tpu.matmul %11, %1, %cst_11 {dimension_numbers = #tpu.dot_dimension_numbers<[1], [0], [0], [1], [0, 0, 1, 1], [], []>} : vector<8x36xf32>, vector<36x256xf32>, vector<8x256xf32> -> vector<8x256xf32>
    %c0_12 = arith.constant 0 : index
    %c0_13 = arith.constant 0 : index
    %13 = vector.load %arg6[%c0_12, %c0_13] : memref<8x1xf32, #tpu.memory_space<vmem>>, vector<8x1xf32>
    %14 = vector.broadcast %13 : vector<8x1xf32> to vector<8x256xf32>
    %15 = arith.addf %12, %14 : vector<8x256xf32>
    %cst_14 = arith.constant 0.000000e+00 : f32
    %16 = vector.broadcast %cst_14 : f32 to vector<8x256xf32>
    %17 = arith.maximumf %15, %16 : vector<8x256xf32>
    %c0_15 = arith.constant 0 : index
    %c0_16 = arith.constant 0 : index
    %18 = vector.load %arg3[%c0_15, %c0_16] : memref<8x36xf32, #tpu.memory_space<vmem>>, vector<8x36xf32>
    %cst_17 = arith.constant dense<0.000000e+00> : vector<8x256xf32>
    %19 = tpu.matmul %18, %1, %cst_17 {dimension_numbers = #tpu.dot_dimension_numbers<[1], [0], [0], [1], [0, 0, 1, 1], [], []>} : vector<8x36xf32>, vector<36x256xf32>, vector<8x256xf32> -> vector<8x256xf32>
    %20 = vector.extract_strided_slice %17 {offsets = [0, 239], sizes = [8, 17], strides = [1, 1]} : vector<8x256xf32> to vector<8x17xf32>
    %21 = vector.extract_strided_slice %17 {offsets = [0, 0], sizes = [8, 239], strides = [1, 1]} : vector<8x256xf32> to vector<8x239xf32>
    %22 = tpu.concatenate %20, %21 in 1 : vector<8x17xf32>, vector<8x239xf32> -> vector<8x256xf32>
    %c0_18 = arith.constant 0 : index
    %c0_19 = arith.constant 0 : index
    %c0_20 = arith.constant 0 : index
    %23 = vector.load %arg9[%c0_18, %c0_19, %c0_20] : memref<9x1x256xf32, #tpu.memory_space<vmem>>, vector<1x1x256xf32>
    %24 = vector.shape_cast %23 : vector<1x1x256xf32> to vector<1x256xf32>
    %25 = vector.broadcast %24 : vector<1x256xf32> to vector<8x256xf32>
    %26 = arith.mulf %22, %25 : vector<8x256xf32>
    %c0_21 = arith.constant 0 : index
    %c0_22 = arith.constant 0 : index
    %c0_23 = arith.constant 0 : index
    %27 = vector.load %arg4[%c0_21, %c0_22, %c0_23] : memref<9x8x8xf32, #tpu.memory_space<vmem>>, vector<1x8x8xf32>
    %28 = vector.shape_cast %27 : vector<1x8x8xf32> to vector<8x8xf32>
    %cst_24 = arith.constant dense<0.000000e+00> : vector<8x256xf32>
    %29 = tpu.matmul %28, %26, %cst_24 {dimension_numbers = #tpu.dot_dimension_numbers<[1], [0], [0], [1], [0, 0, 1, 1], [], []>} : vector<8x8xf32>, vector<8x256xf32>, vector<8x256xf32> -> vector<8x256xf32>
    %30 = arith.addf %19, %29 : vector<8x256xf32>
    %31 = vector.extract_strided_slice %17 {offsets = [0, 240], sizes = [8, 16], strides = [1, 1]} : vector<8x256xf32> to vector<8x16xf32>
    %32 = vector.extract_strided_slice %17 {offsets = [0, 0], sizes = [8, 240], strides = [1, 1]} : vector<8x256xf32> to vector<8x240xf32>
    %33 = tpu.concatenate %31, %32 in 1 : vector<8x16xf32>, vector<8x240xf32> -> vector<8x256xf32>
    %c1 = arith.constant 1 : index
    %c0_25 = arith.constant 0 : index
    %c0_26 = arith.constant 0 : index
    %34 = vector.load %arg9[%c1, %c0_25, %c0_26] : memref<9x1x256xf32, #tpu.memory_space<vmem>>, vector<1x1x256xf32>
    %35 = vector.shape_cast %34 : vector<1x1x256xf32> to vector<1x256xf32>
    %36 = vector.broadcast %35 : vector<1x256xf32> to vector<8x256xf32>
    %37 = arith.mulf %33, %36 : vector<8x256xf32>
    %c1_27 = arith.constant 1 : index
    %c0_28 = arith.constant 0 : index
    %c0_29 = arith.constant 0 : index
    %38 = vector.load %arg4[%c1_27, %c0_28, %c0_29] : memref<9x8x8xf32, #tpu.memory_space<vmem>>, vector<1x8x8xf32>
    %39 = vector.shape_cast %38 : vector<1x8x8xf32> to vector<8x8xf32>
    %cst_30 = arith.constant dense<0.000000e+00> : vector<8x256xf32>
    %40 = tpu.matmul %39, %37, %cst_30 {dimension_numbers = #tpu.dot_dimension_numbers<[1], [0], [0], [1], [0, 0, 1, 1], [], []>} : vector<8x8xf32>, vector<8x256xf32>, vector<8x256xf32> -> vector<8x256xf32>
    %41 = arith.addf %30, %40 : vector<8x256xf32>
    %42 = vector.extract_strided_slice %17 {offsets = [0, 241], sizes = [8, 15], strides = [1, 1]} : vector<8x256xf32> to vector<8x15xf32>
    %43 = vector.extract_strided_slice %17 {offsets = [0, 0], sizes = [8, 241], strides = [1, 1]} : vector<8x256xf32> to vector<8x241xf32>
    %44 = tpu.concatenate %42, %43 in 1 : vector<8x15xf32>, vector<8x241xf32> -> vector<8x256xf32>
    %c2 = arith.constant 2 : index
    %c0_31 = arith.constant 0 : index
    %c0_32 = arith.constant 0 : index
    %45 = vector.load %arg9[%c2, %c0_31, %c0_32] : memref<9x1x256xf32, #tpu.memory_space<vmem>>, vector<1x1x256xf32>
    %46 = vector.shape_cast %45 : vector<1x1x256xf32> to vector<1x256xf32>
    %47 = vector.broadcast %46 : vector<1x256xf32> to vector<8x256xf32>
    %48 = arith.mulf %44, %47 : vector<8x256xf32>
    %c2_33 = arith.constant 2 : index
    %c0_34 = arith.constant 0 : index
    %c0_35 = arith.constant 0 : index
    %49 = vector.load %arg4[%c2_33, %c0_34, %c0_35] : memref<9x8x8xf32, #tpu.memory_space<vmem>>, vector<1x8x8xf32>
    %50 = vector.shape_cast %49 : vector<1x8x8xf32> to vector<8x8xf32>
    %cst_36 = arith.constant dense<0.000000e+00> : vector<8x256xf32>
    %51 = tpu.matmul %50, %48, %cst_36 {dimension_numbers = #tpu.dot_dimension_numbers<[1], [0], [0], [1], [0, 0, 1, 1], [], []>} : vector<8x8xf32>, vector<8x256xf32>, vector<8x256xf32> -> vector<8x256xf32>
    %52 = arith.addf %41, %51 : vector<8x256xf32>
    %53 = vector.extract_strided_slice %17 {offsets = [0, 255], sizes = [8, 1], strides = [1, 1]} : vector<8x256xf32> to vector<8x1xf32>
    %54 = vector.extract_strided_slice %17 {offsets = [0, 0], sizes = [8, 255], strides = [1, 1]} : vector<8x256xf32> to vector<8x255xf32>
    %55 = tpu.concatenate %53, %54 in 1 : vector<8x1xf32>, vector<8x255xf32> -> vector<8x256xf32>
    %c3 = arith.constant 3 : index
    %c0_37 = arith.constant 0 : index
    %c0_38 = arith.constant 0 : index
    %56 = vector.load %arg9[%c3, %c0_37, %c0_38] : memref<9x1x256xf32, #tpu.memory_space<vmem>>, vector<1x1x256xf32>
    %57 = vector.shape_cast %56 : vector<1x1x256xf32> to vector<1x256xf32>
    %58 = vector.broadcast %57 : vector<1x256xf32> to vector<8x256xf32>
    %59 = arith.mulf %55, %58 : vector<8x256xf32>
    %c3_39 = arith.constant 3 : index
    %c0_40 = arith.constant 0 : index
    %c0_41 = arith.constant 0 : index
    %60 = vector.load %arg4[%c3_39, %c0_40, %c0_41] : memref<9x8x8xf32, #tpu.memory_space<vmem>>, vector<1x8x8xf32>
    %61 = vector.shape_cast %60 : vector<1x8x8xf32> to vector<8x8xf32>
    %cst_42 = arith.constant dense<0.000000e+00> : vector<8x256xf32>
    %62 = tpu.matmul %61, %59, %cst_42 {dimension_numbers = #tpu.dot_dimension_numbers<[1], [0], [0], [1], [0, 0, 1, 1], [], []>} : vector<8x8xf32>, vector<8x256xf32>, vector<8x256xf32> -> vector<8x256xf32>
    %63 = arith.addf %52, %62 : vector<8x256xf32>
    %c4 = arith.constant 4 : index
    %c0_43 = arith.constant 0 : index
    %c0_44 = arith.constant 0 : index
    %64 = vector.load %arg4[%c4, %c0_43, %c0_44] : memref<9x8x8xf32, #tpu.memory_space<vmem>>, vector<1x8x8xf32>
    %65 = vector.shape_cast %64 : vector<1x8x8xf32> to vector<8x8xf32>
    %cst_45 = arith.constant dense<0.000000e+00> : vector<8x256xf32>
    %66 = tpu.matmul %65, %17, %cst_45 {dimension_numbers = #tpu.dot_dimension_numbers<[1], [0], [0], [1], [0, 0, 1, 1], [], []>} : vector<8x8xf32>, vector<8x256xf32>, vector<8x256xf32> -> vector<8x256xf32>
    %67 = arith.addf %63, %66 : vector<8x256xf32>
    %68 = vector.extract_strided_slice %17 {offsets = [0, 1], sizes = [8, 255], strides = [1, 1]} : vector<8x256xf32> to vector<8x255xf32>
    %69 = vector.extract_strided_slice %17 {offsets = [0, 0], sizes = [8, 1], strides = [1, 1]} : vector<8x256xf32> to vector<8x1xf32>
    %70 = tpu.concatenate %68, %69 in 1 : vector<8x255xf32>, vector<8x1xf32> -> vector<8x256xf32>
    %c5 = arith.constant 5 : index
    %c0_46 = arith.constant 0 : index
    %c0_47 = arith.constant 0 : index
    %71 = vector.load %arg9[%c5, %c0_46, %c0_47] : memref<9x1x256xf32, #tpu.memory_space<vmem>>, vector<1x1x256xf32>
    %72 = vector.shape_cast %71 : vector<1x1x256xf32> to vector<1x256xf32>
    %73 = vector.broadcast %72 : vector<1x256xf32> to vector<8x256xf32>
    %74 = arith.mulf %70, %73 : vector<8x256xf32>
    %c5_48 = arith.constant 5 : index
    %c0_49 = arith.constant 0 : index
    %c0_50 = arith.constant 0 : index
    %75 = vector.load %arg4[%c5_48, %c0_49, %c0_50] : memref<9x8x8xf32, #tpu.memory_space<vmem>>, vector<1x8x8xf32>
    %76 = vector.shape_cast %75 : vector<1x8x8xf32> to vector<8x8xf32>
    %cst_51 = arith.constant dense<0.000000e+00> : vector<8x256xf32>
    %77 = tpu.matmul %76, %74, %cst_51 {dimension_numbers = #tpu.dot_dimension_numbers<[1], [0], [0], [1], [0, 0, 1, 1], [], []>} : vector<8x8xf32>, vector<8x256xf32>, vector<8x256xf32> -> vector<8x256xf32>
    %78 = arith.addf %67, %77 : vector<8x256xf32>
    %79 = vector.extract_strided_slice %17 {offsets = [0, 15], sizes = [8, 241], strides = [1, 1]} : vector<8x256xf32> to vector<8x241xf32>
    %80 = vector.extract_strided_slice %17 {offsets = [0, 0], sizes = [8, 15], strides = [1, 1]} : vector<8x256xf32> to vector<8x15xf32>
    %81 = tpu.concatenate %79, %80 in 1 : vector<8x241xf32>, vector<8x15xf32> -> vector<8x256xf32>
    %c6 = arith.constant 6 : index
    %c0_52 = arith.constant 0 : index
    %c0_53 = arith.constant 0 : index
    %82 = vector.load %arg9[%c6, %c0_52, %c0_53] : memref<9x1x256xf32, #tpu.memory_space<vmem>>, vector<1x1x256xf32>
    %83 = vector.shape_cast %82 : vector<1x1x256xf32> to vector<1x256xf32>
    %84 = vector.broadcast %83 : vector<1x256xf32> to vector<8x256xf32>
    %85 = arith.mulf %81, %84 : vector<8x256xf32>
    %c6_54 = arith.constant 6 : index
    %c0_55 = arith.constant 0 : index
    %c0_56 = arith.constant 0 : index
    %86 = vector.load %arg4[%c6_54, %c0_55, %c0_56] : memref<9x8x8xf32, #tpu.memory_space<vmem>>, vector<1x8x8xf32>
    %87 = vector.shape_cast %86 : vector<1x8x8xf32> to vector<8x8xf32>
    %cst_57 = arith.constant dense<0.000000e+00> : vector<8x256xf32>
    %88 = tpu.matmul %87, %85, %cst_57 {dimension_numbers = #tpu.dot_dimension_numbers<[1], [0], [0], [1], [0, 0, 1, 1], [], []>} : vector<8x8xf32>, vector<8x256xf32>, vector<8x256xf32> -> vector<8x256xf32>
    %89 = arith.addf %78, %88 : vector<8x256xf32>
    %90 = vector.extract_strided_slice %17 {offsets = [0, 16], sizes = [8, 240], strides = [1, 1]} : vector<8x256xf32> to vector<8x240xf32>
    %91 = vector.extract_strided_slice %17 {offsets = [0, 0], sizes = [8, 16], strides = [1, 1]} : vector<8x256xf32> to vector<8x16xf32>
    %92 = tpu.concatenate %90, %91 in 1 : vector<8x240xf32>, vector<8x16xf32> -> vector<8x256xf32>
    %c7 = arith.constant 7 : index
    %c0_58 = arith.constant 0 : index
    %c0_59 = arith.constant 0 : index
    %93 = vector.load %arg9[%c7, %c0_58, %c0_59] : memref<9x1x256xf32, #tpu.memory_space<vmem>>, vector<1x1x256xf32>
    %94 = vector.shape_cast %93 : vector<1x1x256xf32> to vector<1x256xf32>
    %95 = vector.broadcast %94 : vector<1x256xf32> to vector<8x256xf32>
    %96 = arith.mulf %92, %95 : vector<8x256xf32>
    %c7_60 = arith.constant 7 : index
    %c0_61 = arith.constant 0 : index
    %c0_62 = arith.constant 0 : index
    %97 = vector.load %arg4[%c7_60, %c0_61, %c0_62] : memref<9x8x8xf32, #tpu.memory_space<vmem>>, vector<1x8x8xf32>
    %98 = vector.shape_cast %97 : vector<1x8x8xf32> to vector<8x8xf32>
    %cst_63 = arith.constant dense<0.000000e+00> : vector<8x256xf32>
    %99 = tpu.matmul %98, %96, %cst_63 {dimension_numbers = #tpu.dot_dimension_numbers<[1], [0], [0], [1], [0, 0, 1, 1], [], []>} : vector<8x8xf32>, vector<8x256xf32>, vector<8x256xf32> -> vector<8x256xf32>
    %100 = arith.addf %89, %99 : vector<8x256xf32>
    %101 = vector.extract_strided_slice %17 {offsets = [0, 17], sizes = [8, 239], strides = [1, 1]} : vector<8x256xf32> to vector<8x239xf32>
    %102 = vector.extract_strided_slice %17 {offsets = [0, 0], sizes = [8, 17], strides = [1, 1]} : vector<8x256xf32> to vector<8x17xf32>
    %103 = tpu.concatenate %101, %102 in 1 : vector<8x239xf32>, vector<8x17xf32> -> vector<8x256xf32>
    %c8 = arith.constant 8 : index
    %c0_64 = arith.constant 0 : index
    %c0_65 = arith.constant 0 : index
    %104 = vector.load %arg9[%c8, %c0_64, %c0_65] : memref<9x1x256xf32, #tpu.memory_space<vmem>>, vector<1x1x256xf32>
    %105 = vector.shape_cast %104 : vector<1x1x256xf32> to vector<1x256xf32>
    %106 = vector.broadcast %105 : vector<1x256xf32> to vector<8x256xf32>
    %107 = arith.mulf %103, %106 : vector<8x256xf32>
    %c8_66 = arith.constant 8 : index
    %c0_67 = arith.constant 0 : index
    %c0_68 = arith.constant 0 : index
    %108 = vector.load %arg4[%c8_66, %c0_67, %c0_68] : memref<9x8x8xf32, #tpu.memory_space<vmem>>, vector<1x8x8xf32>
    %109 = vector.shape_cast %108 : vector<1x8x8xf32> to vector<8x8xf32>
    %cst_69 = arith.constant dense<0.000000e+00> : vector<8x256xf32>
    %110 = tpu.matmul %109, %107, %cst_69 {dimension_numbers = #tpu.dot_dimension_numbers<[1], [0], [0], [1], [0, 0, 1, 1], [], []>} : vector<8x8xf32>, vector<8x256xf32>, vector<8x256xf32> -> vector<8x256xf32>
    %111 = arith.addf %100, %110 : vector<8x256xf32>
    %c0_70 = arith.constant 0 : index
    %c0_71 = arith.constant 0 : index
    %112 = vector.load %arg7[%c0_70, %c0_71] : memref<8x1xf32, #tpu.memory_space<vmem>>, vector<8x1xf32>
    %113 = vector.broadcast %112 : vector<8x1xf32> to vector<8x256xf32>
    %114 = arith.addf %111, %113 : vector<8x256xf32>
    %cst_72 = arith.constant 0.000000e+00 : f32
    %115 = vector.broadcast %cst_72 : f32 to vector<8x256xf32>
    %116 = arith.maximumf %114, %115 : vector<8x256xf32>
    %117 = arith.addf %10, %116 : vector<8x256xf32>
    %c0_73 = arith.constant 0 : index
    %c0_74 = arith.constant 0 : index
    %c0_75 = arith.constant 0 : index
    %118 = vector.load %arg10[%c0_73, %c0_74, %c0_75] : memref<1x8x256xf32, #tpu.memory_space<vmem>>, vector<1x8x256xf32>
    %119 = vector.shape_cast %118 : vector<1x8x256xf32> to vector<8x256xf32>
    %120 = vector.shape_cast %117 : vector<8x256xf32> to vector<1x8x256xf32>
    tpu.vector_store %arg10[%c0_73, %c0_74, %c0_75], %120 {strides = array<i32>} : memref<1x8x256xf32, #tpu.memory_space<vmem>>, vector<1x8x256xf32>,
    return
  }
  func.func @transform_0(%arg0: i32) -> (i32, i32, i32) {
    %c0_i32 = arith.constant 0 : i32
    %c0_i32_0 = arith.constant 0 : i32
    %c0_i32_1 = arith.constant 0 : i32
    return %arg0, %c0_i32, %c0_i32_0 : i32, i32, i32
  }
  func.func @transform_1(%arg0: i32) -> (i32, i32) {
    %c0_i32 = arith.constant 0 : i32
    %c0_i32_0 = arith.constant 0 : i32
    %c0_i32_1 = arith.constant 0 : i32
    return %c0_i32, %c0_i32_0 : i32, i32
  }
  func.func @transform_2(%arg0: i32) -> (i32, i32) {
    %c0_i32 = arith.constant 0 : i32
    %c0_i32_0 = arith.constant 0 : i32
    %c0_i32_1 = arith.constant 0 : i32
    return %c0_i32, %c0_i32_0 : i32, i32
  }
  func.func @transform_3(%arg0: i32) -> (i32, i32, i32) {
    %c0_i32 = arith.constant 0 : i32
    %c0_i32_0 = arith.constant 0 : i32
    %c0_i32_1 = arith.constant 0 : i32
    %c0_i32_2 = arith.constant 0 : i32
    return %c0_i32, %c0_i32_0, %c0_i32_1 : i32, i32, i32
  }
  func.func @transform_4(%arg0: i32) -> (i32, i32) {
    %c0_i32 = arith.constant 0 : i32
    %c0_i32_0 = arith.constant 0 : i32
    %c0_i32_1 = arith.constant 0 : i32
    return %c0_i32, %c0_i32_0 : i32, i32
  }
  func.func @transform_5(%arg0: i32) -> (i32, i32) {
    %c0_i32 = arith.constant 0 : i32
    %c0_i32_0 = arith.constant 0 : i32
    %c0_i32_1 = arith.constant 0 : i32
    return %c0_i32, %c0_i32_0 : i32, i32
  }
  func.func @transform_6(%arg0: i32) -> (i32, i32) {
    %c0_i32 = arith.constant 0 : i32
    %c0_i32_0 = arith.constant 0 : i32
    %c0_i32_1 = arith.constant 0 : i32
    return %c0_i32, %c0_i32_0 : i32, i32
  }
  func.func @transform_7(%arg0: i32) -> (i32, i32) {
    %c0_i32 = arith.constant 0 : i32
    %c0_i32_0 = arith.constant 0 : i32
    %c0_i32_1 = arith.constant 0 : i32
    return %c0_i32, %c0_i32_0 : i32, i32
  }
  func.func @transform_8(%arg0: i32) -> (i32, i32, i32) {
    %c0_i32 = arith.constant 0 : i32
    %c0_i32_0 = arith.constant 0 : i32
    %c0_i32_1 = arith.constant 0 : i32
    %c0_i32_2 = arith.constant 0 : i32
    return %c0_i32, %c0_i32_0, %c0_i32_1 : i32, i32, i32
  }
  func.func @transform_9(%arg0: i32) -> (i32, i32, i32) {
    %c0_i32 = arith.constant 0 : i32
    %c0_i32_0 = arith.constant 0 : i32
    %c0_i32_1 = arith.constant 0 : i32
    return %arg0, %c0_i32, %c0_i32_0 : i32, i32, i32
  }
}

</mosaic_0001>

<bundles_post_ra>
// kernel: tpu_custom_call.1
= control target key start
LH: loop header
LB: loop body
LE: loop exit
PB: predicated region body
PF: predicated region fallthrough
CT: control target
= control target key end

     0   :  { %14 = vsyncpa [#allocation3], 0  ;;  %s2120_s0 = inlined_call_operand.vmem [shape: f32[2,36,256], index: 0, kind: input, shape index: {}]   ;;  %s2121_s1 = inlined_call_operand.vmem [shape: f32[8,36], index: 1, kind: input, shape index: {}]   ;;  %s2122_s2 = inlined_call_operand.vmem [shape: f32[8,36], index: 2, kind: input, shape index: {}]   ;;  %s2123_s3 = inlined_call_operand.vmem [shape: f32[9,8,8], index: 3, kind: input, shape index: {}]   ;;  %s2124_s4 = inlined_call_operand.vmem [shape: f32[8,4], index: 4, kind: input, shape index: {}]   ;;  %s2125_s5 = inlined_call_operand.vmem [shape: f32[8,1], index: 5, kind: input, shape index: {}]   ;;  %s2126_s6 = inlined_call_operand.vmem [shape: f32[8,1], index: 6, kind: input, shape index: {}]   ;;  %s2127_s7 = inlined_call_operand.vmem [shape: f32[8,1], index: 7, kind: input, shape index: {}]   ;;  %s2128_s8 = inlined_call_operand.vmem [shape: f32[9,1,256], index: 8, kind: input, shape index: {}]   ;;  %s2129_s9 = inlined_call_operand.hbm [shape: f32[2,8,256], index: 9, kind: output, shape index: {}]  }
   0x1   :  { %16 = vsyncpa [#allocation3 + $0x1], 0  ;;  %s1844_s30 = smov 0   ;;  %s1846_s10 = smov 0  }
   0x2   :  { %s1848_s11 = smov 0   ;;  %s1850_s12 = smov 0  }
   0x3 LB: > { %s1865_s13 = sadd.s32 4294967295, %s1781_s12   ;;  %s1588_s14 = sadd.s32 4294967294, %s1781_s12   ;;  %s1781_s12 = sphi %s1850_s12, %s2135_s12   ;;  %s1777_s11 = sphi %s1848_s11, %s2134_s11   ;;  %s1773_s10 = sphi %s1846_s10, %s2133_s10   ;;  %s1769_s30 = sphi %s1844_s30, %s2132_s30  }
   0x4   : > { %s1869_s15 = sadd.s32 1, %s1781_s12   ;;  %s223_s16 = sadd.s32 1, %s1777_s11 }
   0x5   : > { %s220_s17 = ssub.s32 %s1781_s12, %s1869_s15  ;;  %p233_p0 = scmp.ne.s32.totalorder %s1777_s11, %s1773_s10 }
   0x6   : > { %p221_p1 = scmp.eq.s32.totalorder %s220_s17, 0  ;;  %p234_p2 = scmp.eq.s32.totalorder %s1865_s13, 1 }
   0x7   : > { %p239_p3 = scmp.ne.s32.totalorder %s1773_s10, %s1769_s30  ;;  %p240_p4 = scmp.eq.s32.totalorder %s1588_s14, 1 }
   0x8   : > { %s1880_s18 = scalar_select %p221_p1, %s1777_s11, %s223_s16  }
   0x9   : > { %p1882_p5 = por %p234_p2, %p233_p0  ;;  %p1886_p6 = por %p240_p4, %p239_p3 }
   0xa   : > { %p1591_p7 = scmp.ge.s32.totalorder %s1781_s12, 1  ;;  %p290_p8 = scmp.lt.s32.totalorder %s1781_s12, 3 }
   0xc   : > { %p291_p9 = pnand %p1591_p7, %p290_p8 }
   0xd   : > { %p326_p10 = scmp.lt.s32.totalorder (!%p291_p9), %s1865_s13, 1  ;;  %v1783_v0 = vmov (!%p291_p9), 0.0   ;;  %v435_v1 = vld [vmem:[%s2125_s5] sm:$0xff] (!%p291_p9)  ;;  %v1784_v2 = vmov (!%p291_p9), 0   ;;  %vm354_vm0 = vcmask (!%p291_p9), 1043456   ;;  %vm350_vm1 = vcmask (!%p291_p9), 31744  }
   0xe   : > { %294 = sbr.rel (%p291_p9) target bundleno = 668 (0x29c), region = 56  ;;  %425 = vmatprep.mubr.f32.mxu1 (!%p291_p9), %v1783_v0  ;;  %795 = vmatprep.mubr.f32.mxu0 (!%p291_p9), %v1783_v0  ;;  %v343_v3 = vld [vmem:[%s2124_s4] sm:$0xff] (!%p291_p9)  ;;  %vm441_vm2 = vcmask (!%p291_p9), 293888   ;;  %s1785_s17 = smov (!%p291_p9), 16   ;;  %v539_v32 = vlaneseq (!%p291_p9)  ;;  %vm706_vm3 = vcmask (!%p291_p9), 130048   ;;  %vm809_vm4 = vcmask (!%p291_p9), 121856  }
   0xf   : > { %1717 = vset.pattern.permute.xlu0 (!%p291_p9), %v1784_v2  ;;  %1718 = vset.pattern.permute.xlu1 (!%p291_p9), %v1784_v2  ;;  %v434_v20 = vld [vmem:[%s2121_s1] sm:$0xff] (!%p291_p9)  ;;  %s1786_s21 = smov (!%p291_p9), 15   ;;  %s1787_s22 = smov (!%p291_p9), 1   ;;  %vm552_vm5 = vcmask (!%p291_p9), 64512   ;;  %v1605_v49 = vld [vmem:[%s2123_s3 + $0x8] sm:$0xff] (!%p291_p9)  ;;  %vm912_vm6 = vcmask (!%p291_p9), 7168  }
  0x10   : > { %438 = vperm.xlu0 (!%p291_p9), %1717, %v435_v1   ;;  %s1790_s25 = smov (!%p291_p9), 17   ;;  %s1791_s26 = smov (!%p291_p9), 112   ;;  %v344_v30 = vld [vmem:[%s2127_s7] sm:$0xff] (!%p291_p9)  ;;  %v540_v33 = vshrl.u32 (!%p291_p9), %v539_v32, 7  ;;  %v1608_v1 = vld [vmem:[%s2123_s3 + $0x10] sm:$0xff] (!%p291_p9)  ;;  %vm1092_vm7 = vcmask (!%p291_p9), 1039360  }
  0x11   : > { %v1500_v31 = vld [vmem:[%s2126_s6] sm:$0xff] (!%p291_p9)  ;;  %vm532_vm8 = vcmask (!%p291_p9), 138240   ;;  %vm1195_vm9 = vcmask (!%p291_p9), 924672   ;;  %vm1298_vm10 = vcmask (!%p291_p9), 916480   ;;  %vm1401_vm11 = vcmask (!%p291_p9), 908288   ;;  %s1793_s29 = smov (!%p291_p9), [#allocation2]  }
  0x12   : > { %v1963_v34 = vsub.s32 (!%p291_p9), 0, %v540_v33  ;;  %v1965_v35 = vsub.s32 (!%p291_p9), 1, %v540_v33  ;;  %v1604_v36 = vld [vmem:[%s2128_s8 + $0x2] sm:$0x3] (!%p291_p9)  ;;  %v1607_v40 = vld [vmem:[%s2128_s8 + $0x4] sm:$0x3] (!%p291_p9) }
  0x13   : > { %v1610_v50 = vld [vmem:[%s2128_s8 + $0x6] sm:$0x3] (!%p291_p9)  ;;  %s1723_s14 = sshll.u32 (!%p291_p9), %s1793_s29, 4  ;;  %s1724_s14 = int_to_ptr.vmem [resolvable:$false] %s1723_s14 }
  0x14   : > { %v721_v37 = vrot.slane (!%p291_p9), %v1604_v36, %v1965_v35  ;;  %v717_v38 = vrot.slane (!%p291_p9), %v1604_v36, %v1963_v34  ;;  %v820_v44 = vrot.slane (!%p291_p9), %v1607_v40, %v1963_v34  ;;  %v824_v45 = vrot.slane (!%p291_p9), %v1607_v40, %v1965_v35  ;;  %v1613_v36 = vld [vmem:[%s2123_s3 + $0x20] sm:$0xff] (!%p291_p9)  ;;  %s1725_s16 = scalar_lea.vmem (!%p291_p9), %s1724_s14, 512 }
  0x15   : > { %s327_s23 = scalar_select %p326_p10, %s1865_s13, 1  ;;  %v927_v56 = vrot.slane %v1610_v50, %v1965_v35  ;;  %v923_v59 = vrot.slane %v1610_v50, %v1963_v34 }
  0x17   : > { %s1667_s24 = smul.u32 80, %s327_s23  ;;  %s1788_s23 = smov 127  }
  0x19   : > { %s330_s27 = scalar_lea.vmem %s2120_s0, %s1667_s24  ;;  %s1789_s24 = smov 113  }
  0x1a   : > { %v342_v4 = vld [vmem:[%s330_s27 + $0x28] sm:$0xf]  ;;  %v341_v5 = vld [vmem:[%s330_s27 + $0x20] sm:$0xf]  ;;  %v334_v7 = vld [vmem:[%s330_s27 + $0x18] sm:$0xff] }
  0x1b   : > { %v332_v6 = vld [vmem:[%s330_s27 + $0x8] sm:$0xff]  ;;  %1594 = vmatprep.subr.msk.mxu1 %vm354_vm0, %v342_v4  ;;  %v331_v8 = vld [vmem:[%s330_s27] sm:$0xff]  ;;  %v333_v9 = vld [vmem:[%s330_s27 + $0x10] sm:$0xff] }
  0x1c   : > { %1595 = vmatpush1.msk.msra.mxu1 %vm354_vm0, %v341_v5  ;;  %v1907_v10 = vpack.c.bf16 %v334_v7, %v332_v6  ;;  %v1909_v11 = vpack.c.bf16 %v333_v9, %v331_v8  ;;  %v336_v12 = vld [vmem:[%s330_s27 + $0x28] sm:$0xff]  ;;  %v338_v13 = vld [vmem:[%s330_s27 + $0x38] sm:$0xff]  ;;  %v335_v14 = vld [vmem:[%s330_s27 + $0x20] sm:$0xff] }
  0x1d   : > { %1596 = vmatmul.mubr.msk.f32.vlgmr.msra.gmra.mrb[0].mxu1 %vm350_vm1, %v343_v3  ;;  %v1911_v15 = vpack.c.bf16 %v338_v13, %v336_v12  ;;  %v337_v16 = vld [vmem:[%s330_s27 + $0x30] sm:$0xff]  ;;  %v1919_v18 = vld [vmem:[%s330_s27 + $0x48] sm:$0xf]  ;;  %v1924_v19 = vld [vmem:[%s330_s27 + $0x40] sm:$0xf]  ;;  %s1792_s27 = smov 111  }
  0x1e   : > { %1634 = vmatprep.subr.bf16.mxu1 %v1907_v10  ;;  %515 = vmatprep.mubr.f32.mxu1 %v1783_v0  ;;  %v1916_v17 = vpack.c.bf16 %v337_v16, %v335_v14  ;;  %v1615_v4 = vld [vmem:[%s2128_s8 + $0xa] sm:$0x3]  ;;  %v537_v6 = vld [vmem:[%s2128_s8] sm:$0x3]  ;;  %v1611_v16 = vld [vmem:[%s2123_s3 + $0x18] sm:$0xff] }
  0x1f   : > { %1636 = vmatpush1.bf16.msra.mxu1 %v1909_v11  ;;  %v1108_v8 = vrot.slane %v1615_v4, %v1965_v35  ;;  %v542_v9 = vrot.slane %v537_v6, %v1963_v34  ;;  %v546_v12 = vrot.slane %v537_v6, %v1965_v35 }
  0x20   : > { %1638 = vmatprep.subr.bf16.mxu1 %v1911_v15 }
  0x23   : > { %1640 = vmatpush1.bf16.msra.mxu1 %v1916_v17 }
  0x24   : > { %1597 = vmatprep.subr.msk.mxu1 %vm354_vm0, %v1919_v18 }
  0x27   : > { %1598 = vmatpush1.msk.msra.mxu1 %vm354_vm0, %v1924_v19 }
  0x28   : > { %1599 = vmatmul.mubr.msk.f32.vlgmr.msra.gmra.mrb[2].mxu1 %vm441_vm2, %v434_v20 }
  0x29   : > { %620 = vmatprep.mubr.f32.mxu1 %v1783_v0 }
  0x8f   : > { %v439_v23 = vpop.permute.xlu0 %438 }
  0xf0   : > { %v1933_v21 = vpop.f32.mrb[0].mxu1 }
  0xf1   : > { %v1935_v22 = vpop.f32.mrb[1].mxu1 }
  0xfb   : > { %v517_v24 = vpop.f32.mrb[2].mxu1 }
  0xfc   : > { %v518_v25 = vadd.f32 %v517_v24, %v439_v23  ;;  %v519_v26 = vpop.f32.mrb[3].mxu1 }
  0xfd   : > { %v520_v27 = vadd.f32 %v519_v26, %v439_v23 }
  0xfe   : > { %v1937_v28 = vmax.f32 %v518_v25, 0.0 }
  0xff   : > { %v1939_v29 = vmax.f32 %v520_v27, 0.0 }
 0x100   : > { %704 = vrot.lane.b32.xlu1 %v1937_v28, %s1785_s17 }
 0x101   : > { %701 = vrot.lane.b32.xlu0 %v1939_v29, %s1785_s17  ;;  %s323_s17 = sand.u32 1, %s1773_s10  }
 0x102   : > { %s1515_s28 = scalar_lea.sflag [#allocation3], %s323_s17 }
 0x104   : > { %804 = vrot.lane.b32.xlu1 %v1939_v29, %s1786_s21 }
 0x105   : > { %807 = vrot.lane.b32.xlu0 %v1937_v28, %s1786_s21  ;;  %s1592_s21 = sshll.u32 %s323_s17, 4 }
 0x108   : > { %907 = vrot.lane.b32.xlu1 %v1939_v29, %s1787_s22 }
 0x109   : > { %910 = vrot.lane.b32.xlu0 %v1937_v28, %s1787_s22  ;;  %s1632_s22 = sshll.u32 %s1865_s13, 8 }
 0x10c   : > { %1088 = vrot.lane.b32.xlu1 %v1937_v28, %s1788_s23 }
 0x10d   : > { %1090 = vrot.lane.b32.xlu0 %v1939_v29, %s1788_s23  ;;  %s325_s23 = scalar_lea.vmem [#allocation2], %s1592_s21 }
 0x110   : > { %1191 = vrot.lane.b32.xlu1 %v1937_v28, %s1789_s24 }
 0x111   : > { %1193 = vrot.lane.b32.xlu0 %v1939_v29, %s1789_s24  ;;  %s1529_s24 = sshll.u32 %s325_s23, 4  ;;  %s2080_s24 = int_to_ptr.vmem [resolvable:$true] %s1529_s24 }
 0x112   : > { %s1719_s13 = scalar_lea.vmem %s2080_s24, 256  ;;  %p1726_p0 = scmp.lt.s32.totalorder %s2080_s24, %s1724_s14 }
 0x113   : > { %p1720_p11 = scmp.ne.s32.totalorder %s2080_s24, %s1719_s13  ;;  %p1727_p1 = scmp.lt.s32.totalorder %s1725_s16, %s1719_s13 }
 0x114   : > { %526 = vrot.lane.b32.xlu1 %v1939_v29, %s1790_s25 }
 0x115   : > { %530 = vrot.lane.b32.xlu0 %v1937_v28, %s1790_s25  ;;  %p1721_p12 = pnand %p1720_p11, %p1882_p5  ;;  %p1728_p2 = por %p1727_p1, %p1726_p0 }
 0x117   : > { %p1722_p13 = pneg %p1721_p12 }
 0x118   : > { %1294 = vrot.lane.b32.xlu1 %v1937_v28, %s1791_s26 }
 0x119   : > { %1296 = vrot.lane.b32.xlu0 %v1939_v29, %s1791_s26  ;;  %p1729_p3 = pnand %p1728_p2, %p1722_p13 }
 0x11c   : > { %1397 = vrot.lane.b32.xlu1 %v1937_v28, %s1792_s27 }
 0x11d   : > { %1399 = vrot.lane.b32.xlu0 %v1939_v29, %s1792_s27  ;;  %s2078_s27 = scalar_lea.hbm %s2129_s9, %s1632_s22 }
 0x120   : > { %347 = vperm.xlu1 %1718, %v344_v30   ;;  %v551_v30 = vld [vmem:[%s2123_s3] sm:$0xff] }
 0x121   : > { %1503 = vperm.xlu0 %1717, %v1500_v31   ;;  %v1104_v31 = vrot.slane %v1615_v4, %v1963_v34 }
 0x172   : > { %v705_v39 = vpop.permute.xlu1 %704 }
 0x173   : > { %v702_v41 = vpop.permute.xlu0 %701 }
 0x174   : > { %v710_v42 = vsel %vm706_vm3, %v702_v41, %v705_v39  ;;  %v707_v43 = vsel %vm706_vm3, %v705_v39, %v702_v41 }
 0x175   : > { %v725_v46 = vmul.f32 %v721_v37, %v707_v43  ;;  %v724_v47 = vmul.f32 %v717_v38, %v710_v42  ;;  %v524_v42 = vld [vmem:[%s2122_s2] sm:$0xff] }
 0x176   : > { %v805_v48 = vpop.permute.xlu1 %804 }
 0x177   : > { %v808_v51 = vpop.permute.xlu0 %807  ;;  %731 = vmatprep.subr.mxu0 %v725_v46 }
 0x178   : > { %v810_v52 = vsel %vm809_vm4, %v808_v51, %v805_v48  ;;  %v813_v53 = vsel %vm809_vm4, %v805_v48, %v808_v51  ;;  %732 = vmatpush1.msra.mxu0 %v724_v47  ;;  %v1619_v51 = vld [vmem:[%s2123_s3 + $0x30] sm:$0xff] }
 0x179   : > { %v827_v54 = vmul.f32 %v820_v44, %v813_v53  ;;  %v828_v55 = vmul.f32 %v824_v45, %v810_v52  ;;  %1606 = vmatmul.mubr.msk.f32.vlgmr.msra.gmra.mrb[0].mxu0 %vm552_vm5, %v1605_v49  ;;  %v1616_v44 = vld [vmem:[%s2123_s3 + $0x28] sm:$0xff]  ;;  %v1624_v45 = vld [vmem:[%s2128_s8 + $0x10] sm:$0x3] }
 0x17a   : > { %v908_v57 = vpop.permute.xlu1 %907  ;;  %898 = vmatprep.mubr.f32.mxu0 %v1783_v0  ;;  %v1417_v49 = vrot.slane %v1624_v45, %v1965_v35 }
 0x17b   : > { %v911_v58 = vpop.permute.xlu0 %910  ;;  %834 = vmatprep.subr.mxu0 %v828_v55 }
 0x17c   : > { %v913_v60 = vsel %vm912_vm6, %v911_v58, %v908_v57  ;;  %835 = vmatpush1.msra.mxu0 %v827_v54  ;;  %v916_v61 = vsel %vm912_vm6, %v908_v57, %v911_v58  ;;  %v1413_v54 = vrot.slane %v1624_v45, %v1963_v34  ;;  %v1625_v57 = vld [vmem:[%s2123_s3 + $0x40] sm:$0xff] }
 0x17d   : > { %v931_v62 = vmul.f32 %v927_v56, %v913_v60  ;;  %v930_v3 = vmul.f32 %v923_v59, %v916_v61 }
 0x17e   : > { %v1089_v63 = vpop.permute.xlu1 %1088 }
 0x17f   : > { %v1091_v2 = vpop.permute.xlu0 %1090  ;;  %937 = vmatprep.subr.mxu0 %v931_v62 }
 0x180   : > { %v1097_v13 = vsel %vm1092_vm7, %v1091_v2, %v1089_v63  ;;  %v1093_v32 = vsel %vm1092_vm7, %v1089_v63, %v1091_v2 }
 0x181   : > { %1609 = vmatmul.mubr.msk.f32.vlgmr.msra.gmra.mrb[0].mxu0 %vm552_vm5, %v1608_v1  ;;  %v1112_v25 = vmul.f32 %v1108_v8, %v1097_v13  ;;  %v1111_v37 = vmul.f32 %v1104_v31, %v1093_v32 }
 0x182   : > { %938 = vmatpush1.msra.mxu0 %v930_v3  ;;  %v1192_v5 = vpop.permute.xlu1 %1191  ;;  %1001 = vmatprep.mubr.f32.mxu0 %v1783_v0 }
 0x183   : > { %1015 = vmatprep.subr.mxu0 %v1939_v29  ;;  %v1194_v7 = vpop.permute.xlu0 %1193  ;;  %v1618_v29 = vld [vmem:[%s2128_s8 + $0xc] sm:$0x3] }
 0x184   : > { %v1211_v33 = vrot.slane %v1618_v29, %v1965_v35 }
 0x186   : > { %v527_v14 = vpop.permute.xlu1 %526 }
 0x187   : > { %v531_v20 = vpop.permute.xlu0 %530 }
 0x188   : > { %v533_v23 = vsel %vm532_vm8, %v531_v20, %v527_v14  ;;  %v536_v24 = vsel %vm532_vm8, %v527_v14, %v531_v20 }
 0x189   : > { %v549_v26 = vmul.f32 %v542_v9, %v536_v24  ;;  %v550_v27 = vmul.f32 %v546_v12, %v533_v23  ;;  %1612 = vmatmul.mubr.msk.f32.vlgmr.msra.gmra.mrb[0].mxu0 %vm552_vm5, %v1611_v16 }
 0x18a   : > { %1016 = vmatpush1.msra.mxu0 %v1937_v28  ;;  %1079 = vmatprep.mubr.f32.mxu0 %v1783_v0  ;;  %v1200_v28 = vsel %vm1195_vm9, %v1194_v7, %v1192_v5  ;;  %v1295_v39 = vpop.permute.xlu1 %1294 }
 0x18b   : > { %1118 = vmatprep.subr.mxu0 %v1112_v25  ;;  %556 = vmatprep.subr.mxu1 %v550_v27  ;;  %v1215_v38 = vmul.f32 %v1211_v33, %v1200_v28  ;;  %v1297_v40 = vpop.permute.xlu0 %1296 }
 0x18c   : > { %557 = vmatpush1.msra.mxu1 %v549_v26  ;;  %v1303_v43 = vsel %vm1298_vm10, %v1297_v40, %v1295_v39 }
 0x18d   : > { %1642 = vmatprep.subr.bf16.mxu1 %v1907_v10  ;;  %1600 = vmatmul.mubr.msk.f32.vlgmr.msra.gmra.mrb[4].mxu1 %vm552_vm5, %v551_v30  ;;  %v1621_v10 = vld [vmem:[%s2128_s8 + $0xe] sm:$0x3] }
 0x18e   : > { %1644 = vmatpush1.bf16.msra.mxu1 %v1909_v11  ;;  %694 = vmatprep.mubr.f32.mxu1 %v1783_v0  ;;  %v1207_v11 = vrot.slane %v1618_v29, %v1963_v34  ;;  %v1314_v41 = vrot.slane %v1621_v10, %v1965_v35  ;;  %v1398_v46 = vpop.permute.xlu1 %1397  ;;  %v1310_v48 = vrot.slane %v1621_v10, %v1963_v34  ;;  %v1622_v35 = vld [vmem:[%s2123_s3 + $0x38] sm:$0xff] }
 0x18f   : > { %1646 = vmatprep.subr.bf16.mxu1 %v1911_v15  ;;  %v1196_v15 = vsel %vm1195_vm9, %v1192_v5, %v1194_v7  ;;  %v1400_v47 = vpop.permute.xlu0 %1399 }
 0x190   : > { %v1406_v50 = vsel %vm1401_vm11, %v1400_v47, %v1398_v46  ;;  %v1402_v55 = vsel %vm1401_vm11, %v1398_v46, %v1400_v47 }
 0x191   : > { %1614 = vmatmul.mubr.msk.f32.vlgmr.msra.gmra.mrb[0].mxu0 %vm552_vm5, %v1613_v36  ;;  %v1421_v53 = vmul.f32 %v1417_v49, %v1406_v50  ;;  %v1420_v56 = vmul.f32 %v1413_v54, %v1402_v55 }
 0x192   : > { %1119 = vmatpush1.msra.mxu0 %v1111_v37  ;;  %1182 = vmatprep.mubr.f32.mxu0 %v1783_v0 }
 0x193   : > { %1221 = vmatprep.subr.mxu0 %v1215_v38  ;;  %1648 = vmatpush1.bf16.msra.mxu1 %v1916_v17  ;;  %v1214_v17 = vmul.f32 %v1207_v11, %v1196_v15 }
 0x194   : > { %1601 = vmatprep.subr.msk.mxu1 %vm354_vm0, %v1919_v18  ;;  %v1318_v18 = vmul.f32 %v1314_v41, %v1303_v43 }
 0x197   : > { %1602 = vmatpush1.msk.msra.mxu1 %vm354_vm0, %v1924_v19  ;;  %v1299_v19 = vsel %vm1298_vm10, %v1295_v39, %v1297_v40 }
 0x198   : > { %1603 = vmatmul.mubr.msk.f32.vlgmr.msra.gmra.mrb[4].mxu1 %vm441_vm2, %v524_v42  ;;  %v1317_v52 = vmul.f32 %v1310_v48, %v1299_v19 }
 0x199   : > { %1617 = vmatmul.mubr.msk.f32.vlgmr.msra.gmra.mrb[0].mxu0 %vm552_vm5, %v1616_v44 }
 0x19a   : > { %1222 = vmatpush1.msra.mxu0 %v1214_v17  ;;  %1285 = vmatprep.mubr.f32.mxu0 %v1783_v0 }
 0x19b   : > { %1324 = vmatprep.subr.mxu0 %v1318_v18 }
 0x19f   : > { %v348_v59 = vpop.permute.xlu1 %347 }
 0x1a0   : > { %v428_v61 = vadd.f32 %v1933_v21, %v348_v59  ;;  %v430_v1 = vadd.f32 %v1935_v22, %v348_v59 }
 0x1a1   : > { %1620 = vmatmul.mubr.msk.f32.vlgmr.msra.gmra.mrb[0].mxu0 %vm552_vm5, %v1619_v51 }
 0x1a2   : > { %1325 = vmatpush1.msra.mxu0 %v1317_v52  ;;  %1388 = vmatprep.mubr.f32.mxu0 %v1783_v0  ;;  %v432_v5 = vmax.f32 %v428_v61, 0.0  ;;  %v433_v7 = vmax.f32 %v430_v1, 0.0 }
 0x1a3   : > { %1427 = vmatprep.subr.mxu0 %v1421_v53 }
 0x1a9   : > { %1623 = vmatmul.mubr.msk.f32.vlgmr.msra.gmra.mrb[0].mxu0 %vm552_vm5, %v1622_v35 }
 0x1aa   : > { %1428 = vmatpush1.msra.mxu0 %v1420_v56  ;;  %1491 = vmatprep.mubr.f32.mxu0 %v1783_v0  ;;  %v1504_v0 = vpop.permute.xlu0 %1503 }
 0x1b1   : > { %1626 = vmatmul.mubr.msk.f32.vlgmr.msra.gmra.mrb[0].mxu0 %vm552_vm5, %v1625_v57 }
 0x26b   : > { %v696_v58 = vpop.f32.mrb[4].mxu1 }
 0x26c   : > { %v698_v34 = vpop.f32.mrb[5].mxu1 }
 0x284   : > { %v1493_v60 = vpop.f32.mrb[0].mxu0 }
 0x285   : > { %v1649_v62 = vadd.f32 %v1493_v60, %v696_v58  ;;  %v1495_v63 = vpop.f32.mrb[1].mxu0 }
 0x286   : > { %v1650_v2 = vadd.f32 %v1495_v63, %v698_v34 }
 0x287   : > { %v1506_v3 = vadd.f32 %v1649_v62, %v1504_v0 }
 0x288   : > { %v1507_v4 = vadd.f32 %v1650_v2, %v1504_v0 }
 0x289   : > { %v1508_v6 = vmax.f32 %v1506_v3, 0.0 }
 0x28a   : > { %v1509_v8 = vmax.f32 %v1507_v4, 0.0 }
 0x28b   : > { %v1510_v9 = vadd.f32 %v1508_v6, %v432_v5 }
 0x28c   : > { %v1511_v12 = vadd.f32 %v1509_v8, %v433_v7 }
 0x28d   : > { %1512 = vst [vmem:[%s325_s23] sm:$0xff] %v1510_v9 }
 0x28e   : > { %1513 = vst [vmem:[%s325_s23 + $0x8] sm:$0xff] %v1511_v12 }
 0x28f   : > { %1732 = shalt.err (!%p1729_p3)
}
 0x290   : > { %s1733_s17 = scalar_lea.hbm %s2078_s27, 256  ;;  %s1737_s23 = scalar_lea.hbm %s2129_s9, 512 }
 0x291   : > { %p1734_p4 = scmp.ne.s32.totalorder %s2078_s27, %s1733_s17  ;;  %p1738_p9 = scmp.lt.u32.totalorder %s2078_s27, %s2129_s9 }
 0x292   : > { %p1739_p10 = scmp.lt.u32.totalorder %s1737_s23, %s1733_s17  ;;  %p1741_p12 = scmp.lt.u32.totalorder %s1733_s17, %s2078_s27 }
 0x293   : > { %p1735_p7 = pnand %p1734_p4, %p1882_p5 }
 0x294   : > { %p1740_p11 = por %p1739_p10, %p1738_p9 }
 0x295   : > { %p1736_p8 = pneg %p1735_p7 }
 0x296   : > { %p1742_p13 = por %p1741_p12, %p1740_p11 }
 0x298   : > { %p1743_p0 = pnand %p1742_p13, %p1736_p8 }
 0x29a   : > { %1746 = shalt.err (!%p1743_p0)
}
 0x29b   : > { %1668 = dma.vmem_to_hbm [thread:$0]  (%p1882_p5), %s2080_s24, 256, %s2078_s27, %s1515_s28  }
 0x29c PF: > { %p1674_p1 = scmp.ge.s32.totalorder %s1781_s12, 2  ;;  %s1541_s13 = sand.u32 1, %s1769_s30  }
 0x29d   : > { %s1542_s29 = scalar_lea.sflag [#allocation3], %s1541_s13 }
 0x29e   : > { %p1671_p2 = pnand %p1674_p1, %p1886_p6 }
 0x2a0   : > { %1764 = dma.done.wait (!%p1671_p2), %s1542_s29, 256  }
 0x2a1   : > { %1766 = vsyncadd (!%p1671_p2), %s1542_s29, 4294967040  ;;  %p19_p3 = scmp.ge.s32.totalorder %s1869_s15, 4   ;;  %s2132_s30 = smov %s1773_s10 }
 0x2a2   : > { %s2133_s10 = smov %s1777_s11  ;;  %s2134_s11 = smov %s1880_s18 }
 0x2a3   : > { %s2135_s12 = smov %s1869_s15  ;;  %21 = sbr.rel (!%p19_p3) target bundleno = 3 (0x3), region = 106 }
 0x2aa   :  { %1547 = vsyncpa [#allocation3], 1 }
 0x2ab   :  { %1549 = vsyncpa [#allocation3 + $0x1], 1 }

</bundles_post_ra>
